<compile_context>
chip_gen: v7x
topology: tpu7x:2x2x1
jax: 0.10.0
libtpu: 0.0.40
codegen_flags: <defaults>
</compile_context>

<pallas_src>
import jax
import jax.numpy as jnp
from jax.experimental import pallas as pl
from jax.experimental.pallas import tpu as pltpu

LN_EPS = 1e-5


def sgu_kernel(z1_ref, z2_ref, wp_ref, bp_ref, o_ref):
    # z1_ref, z2_ref, o_ref : (TM, S) tiles
    # wp_ref                : (S, S)  bf16, already includes LN gamma; y = xhat @ wp + bp
    # bp_ref                : (1, S)  f32, already includes beta @ W^T + b
    z2 = z2_ref[...].astype(jnp.float32)
    S = z2.shape[-1]
    inv_s = 1.0 / S

    # LayerNorm statistics over the last axis, single pass (sum / sum-of-squares).
    s1 = jnp.sum(z2, axis=-1, keepdims=True)
    s2 = jnp.sum(z2 * z2, axis=-1, keepdims=True)
    mean = s1 * inv_s
    var = jnp.maximum(s2 * inv_s - mean * mean, 0.0)
    xhat = (z2 - mean) * jax.lax.rsqrt(var + LN_EPS)

    # Linear(seq -> seq) on the MXU: bf16 operands, f32 accumulation.
    y = jnp.dot(xhat.astype(jnp.bfloat16), wp_ref[...],
                preferred_element_type=jnp.float32)
    y = y + bp_ref[...]

    # Gate.
    o_ref[...] = (z1_ref[...].astype(jnp.float32) * y).astype(o_ref.dtype)


def _choose_tm(n_rows, tm_max=512):
    """Largest multiple-of-8 divisor of n_rows <= tm_max, preferring grid >= 2."""
    best_single = None
    for tm in range(min(tm_max, n_rows), 7, -1):
        if n_rows % tm == 0 and tm % 8 == 0:
            if n_rows // tm >= 2:
                return tm
            if best_single is None:
                best_single = tm
    return best_single if best_single is not None else n_rows


def sgu_forward(z1, z2, W, b, gamma, beta, *, tm=None):
    """z1, z2: (B, D, S). W: (S, S) as in nn.Linear (out, in). b/gamma/beta: (S,)."""
    B, D, S = z1.shape
    N = B * D
    if tm is None:
        tm = _choose_tm(N)
    assert N % tm == 0, "row count must be divisible by the row tile"

    z1f = z1.reshape(N, S)
    z2f = z2.reshape(N, S)

    # Fold LN affine + linear bias into the weight:
    #   (xhat*gamma + beta) @ W^T + b == xhat @ (gamma[:,None]*W^T) + (beta @ W^T + b)
    wT_f32 = W.T.astype(jnp.float32)                       # (in, out)
    wp = (gamma.astype(jnp.float32)[:, None] * wT_f32).astype(jnp.bfloat16)
    bp = (beta.astype(jnp.float32) @ wT_f32
          + b.astype(jnp.float32)).reshape(1, S)

    grid = (N // tm,)
    itemsize = jnp.dtype(z1.dtype).itemsize
    cost = pl.CostEstimate(
        flops=2 * N * S * S + 8 * N * S,
        transcendentals=N,                      # rsqrt per row
        bytes_accessed=3 * N * S * itemsize + S * S * 2 + S * 4,
    )

    out = pl.pallas_call(
        sgu_kernel,
        out_shape=jax.ShapeDtypeStruct((N, S), z1.dtype),
        grid_spec=pltpu.PrefetchScalarGridSpec(
            num_scalar_prefetch=0,
            grid=grid,
            in_specs=[
                pl.BlockSpec((tm, S), lambda i: (i, 0)),   # z1 tile
                pl.BlockSpec((tm, S), lambda i: (i, 0)),   # z2 tile
                pl.BlockSpec((S, S), lambda i: (0, 0)),    # W' (bf16, resident)
                pl.BlockSpec((1, S), lambda i: (0, 0)),    # folded bias
            ],
            out_specs=pl.BlockSpec((tm, S), lambda i: (i, 0)),
        ),
        compiler_params=pltpu.CompilerParams(
            dimension_semantics=("parallel",),
            vmem_limit_bytes=64 << 20,
        ),
        cost_estimate=cost,
    )(z1f, z2f, wp, bp)
    return out.reshape(B, D, S)


def sgu_reference(z1, z2, W, b, gamma, beta):
    z2 = z2.astype(jnp.float32)
    mean = jnp.mean(z2, axis=-1, keepdims=True)
    var = jnp.mean((z2 - mean) ** 2, axis=-1, keepdims=True)
    ln = (z2 - mean) / jnp.sqrt(var + LN_EPS) * gamma + beta
    y = ln @ W.T.astype(jnp.float32) + b
    return z1.astype(jnp.float32) * y


if __name__ == "__main__":
    B, D, S = 2, 64, 128  # batch, model dim, seq_length
    key = jax.random.PRNGKey(0)
    k1, k2, kw, kb = jax.random.split(key, 4)

    z1 = jax.random.normal(k1, (B, D, S), dtype=jnp.float32)
    z2 = jax.random.normal(k2, (B, D, S), dtype=jnp.float32)

    # nn.Linear(S, S) default init: U(-1/sqrt(S), 1/sqrt(S)) for W and b.
    bound = 1.0 / (S ** 0.5)
    W = jax.random.uniform(kw, (S, S), minval=-bound, maxval=bound,
                           dtype=jnp.float32)
    b = jax.random.uniform(kb, (S,), minval=-bound, maxval=bound,
                           dtype=jnp.float32)
    # nn.LayerNorm(S) default init: gamma=1, beta=0.
    gamma = jnp.ones((S,), dtype=jnp.float32)
    beta = jnp.zeros((S,), dtype=jnp.float32)

    out = sgu_forward(z1, z2, W, b, gamma, beta)
    out = jax.block_until_ready(out)

    ref = sgu_reference(z1, z2, W, b, gamma, beta)
    assert out.shape == (B, D, S)
    # bf16 matmul operands (f32 accumulation) -> loosen tolerance vs f32 reference.
    max_err = jnp.max(jnp.abs(out - ref))
    assert jnp.allclose(out, ref, atol=5e-2, rtol=5e-2), f"max err {max_err}"

    print("KERNEL_OK")
</pallas_src>

<mosaic_0001>
module attributes {stable_mosaic.version = 11 : i64} {
  func.func @sgu_kernel(%arg0: i32, %arg1: memref<64x128xf32, #tpu.memory_space<vmem>>, %arg2: memref<64x128xf32, #tpu.memory_space<vmem>>, %arg3: memref<128x128xbf16, #tpu.memory_space<vmem>>, %arg4: memref<1x128xf32, #tpu.memory_space<vmem>>, %arg5: memref<64x128xf32, #tpu.memory_space<vmem>>) attributes {dimension_semantics = [#tpu.dimension_semantics<parallel>], iteration_bounds = array<i64: 2>, scalar_prefetch = 0 : i64, scratch_operands = 0 : i64, tpu.core_type = #tpu.core_type<tc>, window_params = [{transform_indices = @transform_0, window_bounds = array<i64: 64, 128>}, {transform_indices = @transform_1, window_bounds = array<i64: 64, 128>}, {pipeline_mode = #tpu.pipeline_mode<synchronous>, transform_indices = @transform_2, window_bounds = array<i64: 128, 128>}, {pipeline_mode = #tpu.pipeline_mode<synchronous>, transform_indices = @transform_3, window_bounds = array<i64: 1, 128>}, {transform_indices = @transform_4, window_bounds = array<i64: 64, 128>}]} {
    %c0 = arith.constant 0 : index
    %c0_0 = arith.constant 0 : index
    %0 = vector.load %arg2[%c0, %c0_0] : memref<64x128xf32, #tpu.memory_space<vmem>>, vector<64x128xf32>
    %cst = arith.constant dense<0.000000e+00> : vector<64xf32>
    %1 = vector.multi_reduction <add>, %0, %cst [1] : vector<64x128xf32> to vector<64xf32>
    %2 = vector.shape_cast %1 : vector<64xf32> to vector<64x1xf32>
    %3 = arith.mulf %0, %0 : vector<64x128xf32>
    %cst_1 = arith.constant dense<0.000000e+00> : vector<64xf32>
    %4 = vector.multi_reduction <add>, %3, %cst_1 [1] : vector<64x128xf32> to vector<64xf32>
    %5 = vector.shape_cast %4 : vector<64xf32> to vector<64x1xf32>
    %cst_2 = arith.constant 7.812500e-03 : f32
    %6 = vector.broadcast %cst_2 : f32 to vector<64x1xf32>
    %7 = arith.mulf %2, %6 : vector<64x1xf32>
    %cst_3 = arith.constant 7.812500e-03 : f32
    %8 = vector.broadcast %cst_3 : f32 to vector<64x1xf32>
    %9 = arith.mulf %5, %8 : vector<64x1xf32>
    %10 = arith.mulf %7, %7 : vector<64x1xf32>
    %11 = arith.subf %9, %10 : vector<64x1xf32>
    %cst_4 = arith.constant 0.000000e+00 : f32
    %12 = vector.broadcast %cst_4 : f32 to vector<64x1xf32>
    %13 = arith.maximumf %11, %12 : vector<64x1xf32>
    %14 = vector.broadcast %7 : vector<64x1xf32> to vector<64x128xf32>
    %15 = arith.subf %0, %14 : vector<64x128xf32>
    %cst_5 = arith.constant 9.99999974E-6 : f32
    %16 = vector.broadcast %cst_5 : f32 to vector<64x1xf32>
    %17 = arith.addf %13, %16 : vector<64x1xf32>
    %18 = math.rsqrt %17 : vector<64x1xf32>
    %19 = vector.broadcast %18 : vector<64x1xf32> to vector<64x128xf32>
    %20 = arith.mulf %15, %19 : vector<64x128xf32>
    %21 = arith.truncf %20 : vector<64x128xf32> to vector<64x128xbf16>
    %c0_6 = arith.constant 0 : index
    %c0_7 = arith.constant 0 : index
    %22 = vector.load %arg3[%c0_6, %c0_7] : memref<128x128xbf16, #tpu.memory_space<vmem>>, vector<128x128xbf16>
    %cst_8 = arith.constant dense<0.000000e+00> : vector<64x128xf32>
    %23 = tpu.matmul %21, %22, %cst_8 {dimension_numbers = #tpu.dot_dimension_numbers<[1], [0], [0], [1], [0, 0, 1, 1], [], []>} : vector<64x128xbf16>, vector<128x128xbf16>, vector<64x128xf32> -> vector<64x128xf32>
    %c0_9 = arith.constant 0 : index
    %c0_10 = arith.constant 0 : index
    %24 = vector.load %arg4[%c0_9, %c0_10] : memref<1x128xf32, #tpu.memory_space<vmem>>, vector<1x128xf32>
    %25 = vector.broadcast %24 : vector<1x128xf32> to vector<64x128xf32>
    %26 = arith.addf %23, %25 : vector<64x128xf32>
    %c0_11 = arith.constant 0 : index
    %c0_12 = arith.constant 0 : index
    %27 = vector.load %arg1[%c0_11, %c0_12] : memref<64x128xf32, #tpu.memory_space<vmem>>, vector<64x128xf32>
    %28 = arith.mulf %27, %26 : vector<64x128xf32>
    %c0_13 = arith.constant 0 : index
    %c0_14 = arith.constant 0 : index
    %29 = vector.load %arg5[%c0_13, %c0_14] : memref<64x128xf32, #tpu.memory_space<vmem>>, vector<64x128xf32>
    tpu.vector_store %arg5[%c0_13, %c0_14], %28 {strides = array<i32>} : memref<64x128xf32, #tpu.memory_space<vmem>>, vector<64x128xf32>,
    return
  }
  func.func @transform_0(%arg0: i32) -> (i32, i32) {
    %c0_i32 = arith.constant 0 : i32
    %c0_i32_0 = arith.constant 0 : i32
    return %arg0, %c0_i32 : i32, i32
  }
  func.func @transform_1(%arg0: i32) -> (i32, i32) {
    %c0_i32 = arith.constant 0 : i32
    %c0_i32_0 = arith.constant 0 : i32
    return %arg0, %c0_i32 : i32, i32
  }
  func.func @transform_2(%arg0: i32) -> (i32, i32) {
    %c0_i32 = arith.constant 0 : i32
    %c0_i32_0 = arith.constant 0 : i32
    %c0_i32_1 = arith.constant 0 : i32
    return %c0_i32, %c0_i32_0 : i32, i32
  }
  func.func @transform_3(%arg0: i32) -> (i32, i32) {
    %c0_i32 = arith.constant 0 : i32
    %c0_i32_0 = arith.constant 0 : i32
    %c0_i32_1 = arith.constant 0 : i32
    return %c0_i32, %c0_i32_0 : i32, i32
  }
  func.func @transform_4(%arg0: i32) -> (i32, i32) {
    %c0_i32 = arith.constant 0 : i32
    %c0_i32_0 = arith.constant 0 : i32
    return %arg0, %c0_i32 : i32, i32
  }
}

</mosaic_0001>

<bundles_post_ra>
// kernel: tpu_custom_call.1
= control target key start
LH: loop header
LB: loop body
LE: loop exit
PB: predicated region body
PF: predicated region fallthrough
CT: control target
= control target key end

     0   :  { %s1515_s0 = inlined_call_operand.hbm [shape: f32[128,128], index: 0, kind: input, shape index: {}]   ;;  %s1516_s1 = inlined_call_operand.hbm [shape: f32[128,128], index: 1, kind: input, shape index: {}]   ;;  %s1517_s2 = inlined_call_operand.hbm [shape: bf16[128,128], index: 2, kind: input, shape index: {}]   ;;  %s1518_s3 = inlined_call_operand.hbm [shape: f32[1,128], index: 3, kind: input, shape index: {}]   ;;  %s1519_s4 = inlined_call_operand.hbm [shape: f32[128,128], index: 4, kind: output, shape index: {}]  }
   0x1   :  { %1523 = sst [smem:[#allocation16_spill]] %s1515_s0 }
   0x2   :  { %9 = vsyncpa [#allocation3], 0 }
   0x3   :  { %11 = vsyncpa [#allocation3 + $0x1], 0 }
   0x4   :  { %12 = vsyncpa [#allocation6], 0 }
   0x5   :  { %14 = vsyncpa [#allocation6 + $0x1], 0 }
   0x6   :  { %15 = vsyncpa [#allocation9], 0 }
   0x7   :  { %16 = vsyncpa [#allocation4], 0 }
   0x8   :  { %18 = vsyncpa [#allocation4 + $0x1], 0  ;;  %s1120_s15 = smov 0   ;;  %s1122_s16 = smov 0  }
   0x9   :  { %s1124_s17 = smov 0   ;;  %s1126_s18 = smov 0  }
   0xa LB: > { %s1141_s19 = sadd.s32 4294967295, %s1082_s18   ;;  %s700_s20 = sadd.s32 4294967294, %s1082_s18   ;;  %s1082_s18 = sphi %s1126_s18, %s1543_s18   ;;  %s1078_s17 = sphi %s1124_s17, %s1542_s17   ;;  %s1074_s16 = sphi %s1122_s16, %s1541_s16   ;;  %s1070_s15 = sphi %s1120_s15, %s1540_s15  }
   0xb   : > { %p44_p0 = scmp.ne.s32.totalorder %s1074_s16, %s1070_s15  ;;  %p1520_p1 = scmp.eq.s32.totalorder %s1141_s19, 0 }
   0xc   : > { %p142_p3 = scmp.eq.s32.totalorder %s700_s20, 1  ;;  %p701_p5 = scmp.ge.s32.totalorder %s1082_s18, 1 }
   0xd   : > { %p1150_p4 = por %p1520_p1, %p44_p0  ;;  %p149_p7 = scmp.lt.s32.totalorder %s1082_s18, 3 }
   0xe   : > { %p1155_p6 = por %p142_p3, %p44_p0  ;;  %s1084_s24 = smov [#allocation7]  }
   0xf   : > { %s1524_s21 = scalar_select %p1150_p4, 1, 0 }
  0x10   : > { %s1525_s22 = scalar_select %p1155_p6, 1, 0 }
  0x11   : > { %p1160_p8 = pnand %p701_p5, %p149_p7  ;;  %s161_s25 = sshll.u32 %s1084_s24, 4  ;;  %s1164_s25 = int_to_ptr.vmem [resolvable:$true] %s161_s25 }
  0x12   : > { %s1085_s27 = smov [#allocation8]   ;;  %s888_s5 = scalar_lea.hbm %s1517_s2, 1024 }
  0x13   : > { %p800_p9 = pneg %p1160_p8  ;;  %s175_s28 = sshll.u32 %s1085_s27, 4  ;;  %s1175_s28 = int_to_ptr.vmem [resolvable:$true] %s175_s28 }
  0x14   : > { %p889_p12 = scmp.ne.s32.totalorder %s1517_s2, %s888_s5  ;;  %p895_p5 = scmp.lt.u32.totalorder %s888_s5, %s1517_s2 }
  0x15   : > { %p1171_p11 = pnand %p800_p9, %p1520_p1 }
  0x17   : > { %p890_p13 = pneg %p1171_p11 }
  0x19   : > { %p891_p0 = pnand %p890_p13, %p889_p12 }
  0x1b   : > { %p892_p3 = pneg %p891_p0 }
  0x1d   : > { %p897_p7 = pnand %p895_p5, %p892_p3 }
  0x1f   : > { %900 = shalt.err (!%p897_p7)
}
  0x20   : > { %s901_s10 = scalar_lea.vmem %s1164_s25, 1024  ;;  %p909_p2 = scmp.lt.s32.totalorder %s1164_s25, %s1164_s25 }
  0x21   : > { %p902_p9 = scmp.ne.s32.totalorder %s1164_s25, %s901_s10  ;;  %p910_p12 = scmp.lt.s32.totalorder %s901_s10, %s901_s10 }
  0x23   : > { %p904_p10 = pnand %p902_p9, %p890_p13  ;;  %p911_p0 = por %p910_p12, %p909_p2 }
  0x25   : > { %p905_p1 = pneg %p904_p10 }
  0x27   : > { %p912_p6 = pnand %p911_p0, %p905_p1 }
  0x29   : > { %915 = shalt.err (!%p912_p6)
}
  0x2a   : > { %s1086_s11 = smov 64   ;;  %s1087_s12 = smov 4  }
  0x2b   : > { %803 = dma.hbm_to_vmem [thread:$0]  (!%p1171_p11), %s1517_s2, 1024, %s1164_s25, [#allocation6], %s1086_s11, %s1086_s11, %s1087_s12  }
  0x2c   : > { %s916_s27 = scalar_lea.hbm %s1518_s3, 16 }
  0x2d   : > { %p917_p2 = scmp.ne.s32.totalorder %s1518_s3, %s916_s27  ;;  %p923_p10 = scmp.lt.u32.totalorder %s916_s27, %s1518_s3 }
  0x2f   : > { %p919_p1 = pnand %p917_p2, %p890_p13 }
  0x31   : > { %p920_p6 = pneg %p919_p1 }
  0x33   : > { %p925_p3 = pnand %p923_p10, %p920_p6 }
  0x35   : > { %928 = shalt.err (!%p925_p3)
}
  0x36   : > { %s929_s25 = scalar_lea.vmem %s1175_s28, 16  ;;  %s936_s7 = scalar_lea.vmem %s1175_s28, 32 }
  0x37   : > { %p930_p5 = scmp.ne.s32.totalorder %s1175_s28, %s929_s25  ;;  %p937_p12 = scmp.lt.s32.totalorder %s1175_s28, %s1175_s28 }
  0x38   : > { %p938_p0 = scmp.lt.s32.totalorder %s936_s7, %s929_s25 }
  0x39   : > { %p932_p7 = pnand %p930_p5, %p890_p13 }
  0x3a   : > { %p939_p2 = por %p938_p0, %p937_p12 }
  0x3b   : > { %p933_p9 = pneg %p932_p7 }
  0x3d   : > { %p940_p1 = pnand %p939_p2, %p933_p9 }
  0x3f   : > { %943 = shalt.err (!%p940_p1)
}
  0x40   : > { %806 = dma.hbm_to_vmem [thread:$0]  (!%p1171_p11), %s1518_s3, 16, %s1175_s28, [#allocation9]  }
  0x41   : > { %s1231_s10 = sadd.s32 1, %s1082_s18   ;;  %s31_s26 = sadd.s32 1, %s1078_s17 }
  0x42   : > { %s28_s11 = ssub.s32 %s1082_s18, %s1231_s10  ;;  %p38_p13 = scmp.ne.s32.totalorder %s1078_s17, %s1074_s16 }
  0x43   : > { %p29_p6 = scmp.eq.s32.totalorder %s28_s11, 0  ;;  %p39_p10 = scmp.eq.s32.totalorder %s1082_s18, 0 }
  0x44   : > { %p1528_p3 = scmp.eq.s32.totalorder %s1141_s19, 1  ;;  %p820_p7 = scmp.lt.s32.totalorder %s1082_s18, 2 }
  0x45   : > { %s1247_s13 = scalar_select %p29_p6, %s1078_s17, %s31_s26  }
  0x46   : > { %p1241_p5 = por %p1528_p3, %p38_p13  ;;  %p40_p9 = por %p39_p10, %p38_p13 }
  0x47   : > { %s186_s14 = sand.u32 1, %s1078_s17   ;;  %s731_s28 = sshll.u32 %s1082_s18, 10 }
  0x48   : > { %s1529_s12 = scalar_select %p1241_p5, 1, 0 }
  0x49   : > { %s1250_s20 = sshll.u32 %s186_s14, 6  ;;  %s1530_s0 = sld [smem:[#allocation16_spill]] }
  0x4a   : > { %s190_s30 = scalar_lea.vmem [#allocation2], %s1250_s20  ;;  %p1263_p11 = pnand %p820_p7, %p40_p9 }
  0x4b   : > { %s197_s5 = sshll.u32 %s190_s30, 4  ;;  %s1267_s25 = scalar_lea.sflag [#allocation3], %s186_s14  ;;  %s1261_s5 = int_to_ptr.vmem [resolvable:$true] %s197_s5 }
  0x4c   : > { %p946_p0 = pneg %p1263_p11 }
  0x4f   : > { %s1258_s29 = scalar_lea.hbm %s1530_s0, %s731_s28  ;;  %s949_s26 = scalar_lea.hbm %s1530_s0, 2048 }
  0x50   : > { %s944_s7 = scalar_lea.hbm %s1258_s29, 1024  ;;  %p950_p13 = scmp.lt.u32.totalorder %s1258_s29, %s1530_s0 }
  0x51   : > { %p945_p12 = scmp.ne.s32.totalorder %s1258_s29, %s944_s7  ;;  %p951_p6 = scmp.lt.u32.totalorder %s949_s26, %s944_s7 }
  0x52   : > { %p953_p3 = scmp.lt.u32.totalorder %s944_s7, %s1258_s29 }
  0x53   : > { %p947_p2 = pnand %p946_p0, %p945_p12  ;;  %p952_p10 = por %p951_p6, %p950_p13 }
  0x55   : > { %p948_p1 = pneg %p947_p2  ;;  %p954_p7 = por %p953_p3, %p952_p10 }
  0x57   : > { %p955_p9 = pnand %p954_p7, %p948_p1 }
  0x59   : > { %958 = shalt.err (!%p955_p9)
}
  0x5a   : > { %s959_s14 = scalar_lea.vmem %s1261_s5, 1024  ;;  %s1088_s27 = smov [#allocation2]  }
  0x5b   : > { %p960_p12 = scmp.ne.s32.totalorder %s1261_s5, %s959_s14  ;;  %s964_s30 = sshll.u32 %s1088_s27, 4  ;;  %s965_s30 = int_to_ptr.vmem [resolvable:$false] %s964_s30 }
  0x5c   : > { %s966_s8 = scalar_lea.vmem %s965_s30, 2048  ;;  %p967_p4 = scmp.lt.s32.totalorder %s1261_s5, %s965_s30 }
  0x5d   : > { %p962_p2 = pnand %p960_p12, %p946_p0  ;;  %p968_p13 = scmp.lt.s32.totalorder %s966_s8, %s959_s14 }
  0x5f   : > { %p963_p5 = pneg %p962_p2  ;;  %p969_p6 = por %p968_p13, %p967_p4 }
  0x61   : > { %p970_p10 = pnand %p969_p6, %p963_p5 }
  0x63   : > { %973 = shalt.err (!%p970_p10)
}
  0x64   : > { %s1089_s7 = smov 128   ;;  %s1090_s9 = smov 8  }
  0x65   : > { %810 = dma.hbm_to_vmem [thread:$0]  (!%p1263_p11), %s1258_s29, 1024, %s1261_s5, %s1267_s25, %s1089_s7, %s1089_s7, %s1090_s9  }
  0x66   : > { %s1303_s24 = scalar_lea.hbm %s1516_s1, %s731_s28  ;;  %s211_s14 = scalar_lea.vmem [#allocation5], %s1250_s20 }
  0x67   : > { %s218_s27 = sshll.u32 %s211_s14, 4  ;;  %s207_s30 = sand.u32 1, %s1082_s18   ;;  %s1306_s27 = int_to_ptr.vmem [resolvable:$true] %s218_s27 }
  0x68   : > { %s1309_s8 = scalar_lea.sflag [#allocation6], %s207_s30  ;;  %s974_s0 = scalar_lea.hbm %s1303_s24, 1024 }
  0x69   : > { %p975_p4 = scmp.ne.s32.totalorder %s1303_s24, %s974_s0  ;;  %s979_s5 = scalar_lea.hbm %s1516_s1, 2048 }
  0x6a   : > { %p980_p3 = scmp.lt.u32.totalorder %s1303_s24, %s1516_s1  ;;  %p981_p7 = scmp.lt.u32.totalorder %s979_s5, %s974_s0 }
  0x6b   : > { %p977_p5 = pnand %p975_p4, %p946_p0  ;;  %p983_p12 = scmp.lt.u32.totalorder %s974_s0, %s1303_s24 }
  0x6c   : > { %p982_p9 = por %p981_p7, %p980_p3 }
  0x6d   : > { %p978_p1 = pneg %p977_p5 }
  0x6e   : > { %p984_p2 = por %p983_p12, %p982_p9 }
  0x70   : > { %p985_p13 = pnand %p984_p2, %p978_p1 }
  0x72   : > { %988 = shalt.err (!%p985_p13)
}
  0x73   : > { %s989_s20 = scalar_lea.vmem %s1306_s27, 1024  ;;  %s1091_s11 = smov [#allocation5]  }
  0x74   : > { %p990_p6 = scmp.ne.s32.totalorder %s1306_s27, %s989_s20  ;;  %s994_s14 = sshll.u32 %s1091_s11, 4  ;;  %s995_s14 = int_to_ptr.vmem [resolvable:$false] %s994_s14 }
  0x75   : > { %s996_s30 = scalar_lea.vmem %s995_s14, 2048  ;;  %p997_p5 = scmp.lt.s32.totalorder %s1306_s27, %s995_s14 }
  0x76   : > { %p992_p10 = pnand %p990_p6, %p946_p0  ;;  %p998_p3 = scmp.lt.s32.totalorder %s996_s30, %s989_s20 }
  0x78   : > { %p993_p4 = pneg %p992_p10  ;;  %p999_p7 = por %p998_p3, %p997_p5 }
  0x7a   : > { %p1000_p9 = pnand %p999_p7, %p993_p4 }
  0x7c   : > { %1003 = shalt.err (!%p1000_p9)
}
  0x7d   : > { %813 = dma.hbm_to_vmem [thread:$0]  (!%p1263_p11), %s1303_s24, 1024, %s1306_s27, %s1309_s8, %s1089_s7, %s1089_s7, %s1090_s9  }
  0x7e   : > { %230 = sbr.rel (%p1160_p8) target bundleno = 572 (0x23c), region = 36  ;;  %s1341_s0 = sand.u32 (!%p1160_p8), 1, %s1074_s16  }
  0x7f   : > { %s1344_s29 = sshll.u32 (!%p1160_p8), %s1341_s0, 6  ;;  %s233_s6 = scalar_lea.sflag (!%p1160_p8), [#allocation3], %s1341_s0 }
  0x80   : > { %s1348_s28 = scalar_lea.vmem (!%p1160_p8), [#allocation2], %s1344_s29  ;;  %p1532_p0 = scmp.ne.s32.totalorder (!%p1160_p8), %s1524_s21, 0 }
  0x85   : > { %1049 = dma.done.wait (%p1532_p0), %s233_s6, 1024  }
  0x86   : > { %1051 = vsyncadd (%p1532_p0), %s233_s6, 4294966272  ;;  %s241_s23 = sand.u32 1, %s1141_s19   ;;  %s245_s9 = scalar_lea.vmem [#allocation5], %s1344_s29 }
  0x87   : > { %s242_s7 = scalar_lea.sflag [#allocation6], %s241_s23 }
  0x88   : > { %1053 = dma.done.wait (%p1532_p0), %s242_s7, 1024  }
  0x89   : > { %1055 = vsyncadd (%p1532_p0), %s242_s7, 4294966272  ;;  %p1533_p8 = scmp.eq.s32.totalorder %s1141_s19, 0 }
  0x8b   : > { %1057 = dma.done.wait (%p1533_p8), [#allocation6], 1024   ;;  %p1534_p11 = pmov %p1533_p8 }
  0x8c   : > { %p1535_p1 = pmov %p1533_p8 }
  0x8d   : > { %1059 = vsyncadd (%p1534_p11), [#allocation6], 4294966272 }
  0x8e   : > { %1061 = dma.done.wait (%p1535_p1), [#allocation9], 16   ;;  %p1536_p12 = pmov %p1535_p1 }
  0x8f   : > { %v1368_v0 = vld [vmem:[%s245_s9 + $0x20] sm:$0xff]  ;;  %v1374_v2 = vld [vmem:[%s245_s9 + $0x28] sm:$0xff]  ;;  %v1378_v4 = vld [vmem:[%s245_s9 + $0x18] sm:$0xff]  ;;  %s282_s21 = scalar_lea.vmem [#allocation10], %s1344_s29  ;;  %s733_s27 = sshll.u32 %s1141_s19, 10 }
  0x90   : > { %1063 = vsyncadd (%p1536_p12), [#allocation9], 4294967280  ;;  %v1370_v1 = vld [vmem:[%s245_s9] sm:$0xff]  ;;  %303 = vadd.xlane.f32.xlu1 %v1368_v0  ;;  %v1376_v3 = vld [vmem:[%s245_s9 + $0x8] sm:$0xff]  ;;  %v316_v10 = vmul.f32 %v1374_v2, %v1374_v2  ;;  %v315_v11 = vmul.f32 %v1368_v0, %v1368_v0  ;;  %v314_v12 = vmul.f32 %v1378_v4, %v1378_v4  ;;  %s585_s24 = sshll.u32 %s282_s21, 4  ;;  %s1471_s19 = scalar_lea.hbm %s1519_s4, %s733_s27  ;;  %s1466_s24 = int_to_ptr.vmem [resolvable:$true] %s585_s24 }
  0x91   : > { %295 = vadd.xlane.f32.xlu0 %v1370_v1  ;;  %v1380_v5 = vld [vmem:[%s245_s9 + $0x10] sm:$0xff]  ;;  %v1386_v6 = vld [vmem:[%s245_s9 + $0x38] sm:$0xff]  ;;  %v312_v8 = vmul.f32 %v1376_v3, %v1376_v3  ;;  %v311_v9 = vmul.f32 %v1370_v1, %v1370_v1  ;;  %v864_v16 = vld [vmem:[#allocation7] sm:$0xff]   ;;  %s572_s25 = scalar_lea.sflag [#allocation4], %s1341_s0  ;;  %s1004_s26 = scalar_lea.vmem %s1466_s24, 1024 }
  0x92   : > { %v1388_v7 = vld [vmem:[%s245_s9 + $0x30] sm:$0xff]  ;;  %v313_v13 = vmul.f32 %v1380_v5, %v1380_v5  ;;  %v318_v14 = vmul.f32 %v1386_v6, %v1386_v6  ;;  %746 = vmatprep.subr.bf16.mxu0 %v864_v16  ;;  %770 = vmatprep.subr.bf16.mxu1 %v864_v16  ;;  %v865_v17 = vld [vmem:[#allocation7 + $0x8] sm:$0xff]   ;;  %v867_v19 = vld [vmem:[#allocation7 + $0x18] sm:$0xff]   ;;  %p1005_p2 = scmp.ne.s32.totalorder %s1466_s24, %s1004_s26  ;;  %p1537_p13 = scmp.ne.s32.totalorder %s1529_s12, 0 }
  0x93   : > { %v317_v15 = vmul.f32 %v1388_v7, %v1388_v7  ;;  %747 = vmatpush3.bf16.msra.mxu0 %v864_v16  ;;  %778 = vmatpush3.bf16.msra.mxu1 %v864_v16  ;;  %v866_v18 = vld [vmem:[#allocation7 + $0x10] sm:$0xff]   ;;  %v868_v20 = vld [vmem:[#allocation7 + $0x20] sm:$0xff]   ;;  %v869_v21 = vld [vmem:[#allocation7 + $0x28] sm:$0xff]   ;;  %s1092_s20 = smov [#allocation10]  }
  0x94   : > { %305 = vadd.xlane.f32.xlu1 %v1374_v2  ;;  %748 = vmatprep.subr.bf16.mxu0 %v865_v17  ;;  %v870_v22 = vld [vmem:[#allocation7 + $0x30] sm:$0xff]   ;;  %v871_v23 = vld [vmem:[#allocation7 + $0x38] sm:$0xff]   ;;  %p1006_p6 = pnand %p1005_p2, %p1537_p13  ;;  %s1008_s11 = sshll.u32 %s1092_s20, 4  ;;  %s1009_s11 = int_to_ptr.vmem [resolvable:$false] %s1008_s11 }
  0x95   : > { %297 = vadd.xlane.f32.xlu0 %v1376_v3  ;;  %771 = vmatprep.subr.bf16.mxu1 %v865_v17  ;;  %s1010_s14 = scalar_lea.vmem %s1009_s11, 2048  ;;  %p1011_p4 = scmp.lt.s32.totalorder %s1466_s24, %s1009_s11 }
  0x96   : > { %p1007_p10 = pneg %p1006_p6  ;;  %p1012_p5 = scmp.lt.s32.totalorder %s1010_s14, %s1004_s26 }
  0x97   : > { %749 = vmatpush3.bf16.msra.mxu0 %v865_v17  ;;  %779 = vmatpush3.bf16.msra.mxu1 %v865_v17 }
  0x98   : > { %301 = vadd.xlane.f32.xlu1 %v1378_v4  ;;  %750 = vmatprep.subr.bf16.mxu0 %v866_v18  ;;  %p1013_p3 = por %p1012_p5, %p1011_p4 }
  0x99   : > { %299 = vadd.xlane.f32.xlu0 %v1380_v5  ;;  %772 = vmatprep.subr.bf16.mxu1 %v866_v18 }
  0x9a   : > { %p1014_p7 = pnand %p1013_p3, %p1007_p10 }
  0x9b   : > { %751 = vmatpush3.bf16.msra.mxu0 %v866_v18  ;;  %780 = vmatpush3.bf16.msra.mxu1 %v866_v18 }
  0x9c   : > { %309 = vadd.xlane.f32.xlu1 %v1386_v6  ;;  %752 = vmatprep.subr.bf16.mxu0 %v867_v19 }
  0x9d   : > { %307 = vadd.xlane.f32.xlu0 %v1388_v7  ;;  %773 = vmatprep.subr.bf16.mxu1 %v867_v19 }
  0x9f   : > { %753 = vmatpush3.bf16.msra.mxu0 %v867_v19  ;;  %781 = vmatpush3.bf16.msra.mxu1 %v867_v19 }
  0xa0   : > { %321 = vadd.xlane.f32.xlu1 %v312_v8  ;;  %754 = vmatprep.subr.bf16.mxu0 %v868_v20 }
  0xa1   : > { %319 = vadd.xlane.f32.xlu0 %v311_v9  ;;  %774 = vmatprep.subr.bf16.mxu1 %v868_v20 }
  0xa3   : > { %755 = vmatpush3.bf16.msra.mxu0 %v868_v20  ;;  %782 = vmatpush3.bf16.msra.mxu1 %v868_v20 }
  0xa4   : > { %329 = vadd.xlane.f32.xlu1 %v316_v10  ;;  %756 = vmatprep.subr.bf16.mxu0 %v869_v21 }
  0xa5   : > { %327 = vadd.xlane.f32.xlu0 %v315_v11  ;;  %775 = vmatprep.subr.bf16.mxu1 %v869_v21 }
  0xa7   : > { %757 = vmatpush3.bf16.msra.mxu0 %v869_v21  ;;  %783 = vmatpush3.bf16.msra.mxu1 %v869_v21 }
  0xa8   : > { %325 = vadd.xlane.f32.xlu1 %v314_v12  ;;  %758 = vmatprep.subr.bf16.mxu0 %v870_v22 }
  0xa9   : > { %323 = vadd.xlane.f32.xlu0 %v313_v13  ;;  %776 = vmatprep.subr.bf16.mxu1 %v870_v22 }
  0xab   : > { %759 = vmatpush3.bf16.msra.mxu0 %v870_v22  ;;  %784 = vmatpush3.bf16.msra.mxu1 %v870_v22 }
  0xac   : > { %333 = vadd.xlane.f32.xlu1 %v318_v14  ;;  %760 = vmatprep.subr.bf16.mxu0 %v871_v23 }
  0xad   : > { %331 = vadd.xlane.f32.xlu0 %v317_v15  ;;  %777 = vmatprep.subr.bf16.mxu1 %v871_v23 }
  0xaf   : > { %761 = vmatpush3.bf16.msra.mxu0 %v871_v23  ;;  %785 = vmatpush3.bf16.msra.mxu1 %v871_v23 }
 0x11d   : > { %v304_v24 = vpop.xlane.xlu1 %303 }
 0x11e   : > { %v296_v25 = vpop.xlane.xlu0 %295  ;;  %v1412_v34 = vmul.f32 0.0078125, %v304_v24 }
 0x11f   : > { %v1408_v32 = vmul.f32 0.0078125, %v296_v25 }
 0x120   : > { %v355_v44 = vmul.f32 %v1412_v34, %v1412_v34 }
 0x121   : > { %v306_v26 = vpop.xlane.xlu1 %305  ;;  %v351_v38 = vmul.f32 %v1408_v32, %v1408_v32 }
 0x122   : > { %v298_v27 = vpop.xlane.xlu0 %297  ;;  %v1414_v35 = vmul.f32 0.0078125, %v306_v26 }
 0x123   : > { %v1410_v33 = vmul.f32 0.0078125, %v298_v27 }
 0x124   : > { %v356_v45 = vmul.f32 %v1414_v35, %v1414_v35 }
 0x125   : > { %v302_v28 = vpop.xlane.xlu1 %301  ;;  %v352_v39 = vmul.f32 %v1410_v33, %v1410_v33 }
 0x126   : > { %v300_v29 = vpop.xlane.xlu0 %299  ;;  %v1424_v46 = vmul.f32 0.0078125, %v302_v28 }
 0x127   : > { %v1426_v53 = vmul.f32 0.0078125, %v300_v29 }
 0x128   : > { %v354_v58 = vmul.f32 %v1424_v46, %v1424_v46 }
 0x129   : > { %v310_v30 = vpop.xlane.xlu1 %309  ;;  %v353_v10 = vmul.f32 %v1426_v53, %v1426_v53 }
 0x12a   : > { %v308_v31 = vpop.xlane.xlu0 %307  ;;  %v1430_v59 = vmul.f32 0.0078125, %v310_v30  ;;  %v376_v30 = vsub.f32 %v1376_v3, %v1410_v33 }
 0x12b   : > { %v1432_v60 = vmul.f32 0.0078125, %v308_v31 }
 0x12c   : > { %v358_v15 = vmul.f32 %v1430_v59, %v1430_v59 }
 0x12d   : > { %v322_v36 = vpop.xlane.xlu1 %321  ;;  %v357_v16 = vmul.f32 %v1432_v60, %v1432_v60 }
 0x12e   : > { %v320_v37 = vpop.xlane.xlu0 %319  ;;  %v344_v40 = vmul.f32 0.0078125, %v322_v36  ;;  %v375_v36 = vsub.f32 %v1370_v1, %v1408_v32  ;;  %v378_v1 = vsub.f32 %v1378_v4, %v1424_v46 }
 0x12f   : > { %v343_v41 = vmul.f32 0.0078125, %v320_v37 }
 0x130   : > { %v360_v42 = vsub.f32 %v344_v40, %v352_v39 }
 0x131   : > { %v359_v43 = vsub.f32 %v343_v41, %v351_v38  ;;  %v330_v47 = vpop.xlane.xlu1 %329 }
 0x132   : > { %v328_v48 = vpop.xlane.xlu0 %327  ;;  %v368_v49 = vmax.f32 %v360_v42, 0.0  ;;  %v348_v51 = vmul.f32 0.0078125, %v330_v47  ;;  %v380_v42 = vsub.f32 %v1374_v2, %v1414_v35 }
 0x133   : > { %v367_v50 = vmax.f32 %v359_v43, 0.0  ;;  %v347_v52 = vmul.f32 0.0078125, %v328_v48  ;;  %v377_v48 = vsub.f32 %v1380_v5, %v1426_v53 }
 0x134   : > { %v384_v54 = vadd.f32 1e-05, %v368_v49  ;;  %v364_v56 = vsub.f32 %v348_v51, %v356_v45  ;;  %v381_v51 = vsub.f32 %v1388_v7, %v1432_v60  ;;  %v550_v7 = vld [vmem:[%s1348_s28 + $0x18] sm:$0xff] }
 0x135   : > { %v383_v55 = vadd.f32 1e-05, %v367_v50  ;;  %v363_v57 = vsub.f32 %v347_v52, %v355_v44  ;;  %v326_v61 = vpop.xlane.xlu1 %325  ;;  %v379_v44 = vsub.f32 %v1368_v0, %v1412_v34  ;;  %v382_v0 = vsub.f32 %v1386_v6, %v1430_v59 }
 0x136   : > { %v324_v62 = vpop.xlane.xlu0 %323  ;;  %872 = vrsqrt.f32 %v384_v54  ;;  %v372_v63 = vmax.f32 %v364_v56, 0.0  ;;  %v346_v9 = vmul.f32 0.0078125, %v326_v61  ;;  %v717_v54 = vld [vmem:[#allocation8] ss:$0 sm:$0xff]  ;;  %v549_v56 = vld [vmem:[%s1348_s28 + $0x10] sm:$0xff] }
 0x137   : > { %v371_v8 = vmax.f32 %v363_v57, 0.0  ;;  %874 = vrsqrt.f32 %v383_v55  ;;  %v345_v11 = vmul.f32 0.0078125, %v324_v62 }
 0x138   : > { %v388_v12 = vadd.f32 1e-05, %v372_v63  ;;  %v362_v14 = vsub.f32 %v346_v9, %v354_v58  ;;  %v547_v58 = vld [vmem:[%s1348_s28] sm:$0xff] }
 0x139   : > { %v387_v13 = vadd.f32 1e-05, %v371_v8  ;;  %v361_v17 = vsub.f32 %v345_v11, %v353_v10  ;;  %v334_v18 = vpop.xlane.xlu1 %333  ;;  %v548_v8 = vld [vmem:[%s1348_s28 + $0x8] sm:$0xff] }
 0x13a   : > { %v332_v19 = vpop.xlane.xlu0 %331  ;;  %876 = vrsqrt.f32 %v388_v12  ;;  %v370_v20 = vmax.f32 %v362_v14, 0.0  ;;  %v350_v21 = vmul.f32 0.0078125, %v334_v18  ;;  %v553_v12 = vld [vmem:[%s1348_s28 + $0x30] sm:$0xff] }
 0x13b   : > { %v349_v22 = vmul.f32 0.0078125, %v332_v19  ;;  %878 = vrsqrt.f32 %v387_v13  ;;  %v369_v23 = vmax.f32 %v361_v17, 0.0 }
 0x13c   : > { %v386_v24 = vadd.f32 1e-05, %v370_v20  ;;  %v366_v25 = vsub.f32 %v350_v21, %v358_v15  ;;  %v554_v20 = vld [vmem:[%s1348_s28 + $0x38] sm:$0xff] }
 0x13d   : > { %v365_v26 = vsub.f32 %v349_v22, %v357_v16  ;;  %v385_v27 = vadd.f32 1e-05, %v369_v23  ;;  %v551_v16 = vld [vmem:[%s1348_s28 + $0x20] sm:$0xff] }
 0x13e   : > { %880 = vrsqrt.f32 %v386_v24  ;;  %v374_v28 = vmax.f32 %v366_v25, 0.0  ;;  %v552_v24 = vld [vmem:[%s1348_s28 + $0x28] sm:$0xff] }
 0x13f   : > { %v373_v29 = vmax.f32 %v365_v26, 0.0  ;;  %882 = vrsqrt.f32 %v385_v27 }
 0x140   : > { %v873_v31 = vpop.eup %872  ;;  %v390_v37 = vadd.f32 1e-05, %v374_v28 }
 0x141   : > { %v389_v38 = vadd.f32 1e-05, %v373_v29  ;;  %v875_v39 = vpop.eup %874  ;;  %v400_v40 = vmul.f32 %v873_v31, %v376_v30 }
 0x142   : > { %884 = vrsqrt.f32 %v390_v37  ;;  %v399_v41 = vmul.f32 %v875_v39, %v375_v36 }
 0x143   : > { %886 = vrsqrt.f32 %v389_v38 }
 0x144   : > { %v877_v43 = vpop.eup %876  ;;  %v407_v3 = vpack.c.bf16 %v400_v40, %v399_v41 }
 0x145   : > { %v879_v33 = vpop.eup %878  ;;  %v404_v45 = vmul.f32 %v877_v43, %v380_v42 }
 0x146   : > { %762 = vmatprep.mubr.bf16.mxu0 %v407_v3  ;;  %v403_v47 = vmul.f32 %v879_v33, %v379_v44 }
 0x148   : > { %v881_v32 = vpop.eup %880  ;;  %v409_v49 = vpack.c.bf16 %v404_v45, %v403_v47 }
 0x149   : > { %v883_v50 = vpop.eup %882  ;;  %v402_v2 = vmul.f32 %v881_v32, %v378_v1 }
 0x14a   : > { %766 = vmatprep.mubr.bf16.mxu1 %v409_v49  ;;  %v401_v35 = vmul.f32 %v883_v50, %v377_v48 }
 0x14c   : > { %v885_v34 = vpop.eup %884  ;;  %v408_v4 = vpack.c.bf16 %v402_v2, %v401_v35 }
 0x14d   : > { %v887_v46 = vpop.eup %886  ;;  %v406_v52 = vmul.f32 %v885_v34, %v382_v0 }
 0x14e   : > { %763 = vmatmul.mubr.bf16.vlgmr.msra.gmra.mrb[0].mxu0 %v408_v4  ;;  %v405_v5 = vmul.f32 %v887_v46, %v381_v51 }
 0x150   : > { %v410_v53 = vpack.c.bf16 %v406_v52, %v405_v5 }
 0x152   : > { %767 = vmatmul.mubr.bf16.vlgmr.msra.gmra.mrb[0].mxu1 %v410_v53 }
 0x221   : > { %v764_v55 = vpop.f32.mrb[0].mxu0 }
 0x222   : > { %v525_v57 = vadd.f32 %v764_v55, %v717_v54  ;;  %v516_v6 = vpop.f32.mrb[1].mxu0 }
 0x223   : > { %v517_v59 = vadd.f32 %v717_v54, %v516_v6  ;;  %v765_v61 = vpop.f32.mrb[2].mxu0 }
 0x224   : > { %v557_v60 = vmul.f32 %v549_v56, %v525_v57  ;;  %v528_v62 = vadd.f32 %v765_v61, %v717_v54  ;;  %v519_v63 = vpop.f32.mrb[3].mxu0 }
 0x225   : > { %v555_v9 = vmul.f32 %v547_v58, %v517_v59  ;;  %v520_v10 = vadd.f32 %v717_v54, %v519_v63  ;;  %v768_v11 = vpop.f32.mrb[0].mxu1 }
 0x226   : > { %565 = vst [vmem:[%s282_s21 + $0x10] sm:$0xff] %v557_v60  ;;  %v558_v13 = vmul.f32 %v550_v7, %v528_v62  ;;  %v541_v14 = vadd.f32 %v768_v11, %v717_v54  ;;  %v532_v15 = vpop.f32.mrb[1].mxu1 }
 0x227   : > { %563 = vst [vmem:[%s282_s21] sm:$0xff] %v555_v9  ;;  %v556_v17 = vmul.f32 %v548_v8, %v520_v10  ;;  %v533_v18 = vadd.f32 %v717_v54, %v532_v15  ;;  %v769_v19 = vpop.f32.mrb[2].mxu1 }
 0x228   : > { %566 = vst [vmem:[%s282_s21 + $0x18] sm:$0xff] %v558_v13  ;;  %v561_v21 = vmul.f32 %v553_v12, %v541_v14  ;;  %v544_v22 = vadd.f32 %v769_v19, %v717_v54  ;;  %v535_v23 = vpop.f32.mrb[3].mxu1 }
 0x229   : > { %564 = vst [vmem:[%s282_s21 + $0x8] sm:$0xff] %v556_v17  ;;  %v559_v25 = vmul.f32 %v551_v16, %v533_v18  ;;  %v536_v26 = vadd.f32 %v717_v54, %v535_v23 }
 0x22a   : > { %569 = vst [vmem:[%s282_s21 + $0x30] sm:$0xff] %v561_v21  ;;  %v562_v27 = vmul.f32 %v554_v20, %v544_v22 }
 0x22b   : > { %567 = vst [vmem:[%s282_s21 + $0x20] sm:$0xff] %v559_v25  ;;  %v560_v28 = vmul.f32 %v552_v24, %v536_v26 }
 0x22c   : > { %570 = vst [vmem:[%s282_s21 + $0x38] sm:$0xff] %v562_v27 }
 0x22d   : > { %568 = vst [vmem:[%s282_s21 + $0x28] sm:$0xff] %v560_v28 }
 0x22e   : > { %1017 = shalt.err (!%p1014_p7)
}
 0x22f   : > { %s1018_s30 = scalar_lea.hbm %s1471_s19, 1024  ;;  %s1022_s28 = scalar_lea.hbm %s1519_s4, 2048 }
 0x230   : > { %p1019_p9 = scmp.ne.s32.totalorder %s1471_s19, %s1018_s30  ;;  %p1023_p11 = scmp.lt.u32.totalorder %s1471_s19, %s1519_s4 }
 0x231   : > { %p1024_p1 = scmp.lt.u32.totalorder %s1022_s28, %s1018_s30  ;;  %p1026_p2 = scmp.lt.u32.totalorder %s1018_s30, %s1471_s19 }
 0x232   : > { %p1020_p0 = pnand %p1019_p9, %p1537_p13 }
 0x233   : > { %p1025_p12 = por %p1024_p1, %p1023_p11 }
 0x234   : > { %p1021_p8 = pneg %p1020_p0 }
 0x235   : > { %p1027_p6 = por %p1026_p2, %p1025_p12 }
 0x237   : > { %p1028_p10 = pnand %p1027_p6, %p1021_p8 }
 0x239   : > { %1031 = shalt.err (!%p1028_p10)
}
 0x23a   : > { %s1093_s9 = smov 128   ;;  %s1094_s21 = smov 8  }
 0x23b   : > { %798 = dma.vmem_to_hbm [thread:$0]  (%p1537_p13), %s1466_s24, 1024, %s1471_s19, %s572_s25, %s1093_s9, %s1093_s9, %s1094_s21  }
 0x23c PF: > { %s600_s27 = sand.u32 1, %s1070_s15   ;;  %p1538_p4 = scmp.ne.s32.totalorder %s1525_s22, 0 }
 0x23d   : > { %p1539_p5 = scmp.ge.s32.totalorder %s1082_s18, 2  ;;  %s601_s8 = scalar_lea.sflag [#allocation4], %s600_s27 }
 0x23f   : > { %p815_p3 = pnand %p1539_p5, %p1538_p4 }
 0x241   : > { %1065 = dma.done.wait (!%p815_p3), %s601_s8, 1024  }
 0x242   : > { %1067 = vsyncadd (!%p815_p3), %s601_s8, 4294966272  ;;  %p21_p7 = scmp.ge.s32.totalorder %s1231_s10, 4   ;;  %s1540_s15 = smov %s1074_s16 }
 0x243   : > { %s1541_s16 = smov %s1078_s17  ;;  %s1542_s17 = smov %s1247_s13 }
 0x244   : > { %s1543_s18 = smov %s1231_s10  ;;  %23 = sbr.rel (!%p21_p7) target bundleno = 10 (0xa), region = 102 }
 0x24b   :  { %606 = vsyncpa [#allocation3], 1 }
 0x24c   :  { %608 = vsyncpa [#allocation3 + $0x1], 1 }
 0x24d   :  { %609 = vsyncpa [#allocation6], 1 }
 0x24e   :  { %611 = vsyncpa [#allocation6 + $0x1], 1 }
 0x24f   :  { %612 = vsyncpa [#allocation9], 1 }
 0x250   :  { %613 = vsyncpa [#allocation4], 1 }
 0x251   :  { %615 = vsyncpa [#allocation4 + $0x1], 1 }

</bundles_post_ra>
